<compile_context>
chip_gen: v7x
topology: tpu7x:2x2x1
jax: 0.10.0
libtpu: 0.0.40
codegen_flags: <defaults>
</compile_context>

<pallas_src>
import jax
import jax.numpy as jnp
from jax.experimental import pallas as pl
from jax.experimental.pallas import tpu as pltpu


def _decoder_kernel(x_ref, w_ref, b_ref, o_ref):
    """Fused decoder: one matmul against the pre-folded effective weight.

    x_ref : (TM, 256)  input pixels, channel-last (rows of M = N*H*W)
    w_ref : (256, 128) effective weight, columns ordered (i1,j1,i2,j2,i3,j3,c)
    b_ref : (1, 128)   effective bias, same column order
    o_ref : (TM, 128)  lane-dense output slab
    """
    o_ref[...] = (
        jnp.dot(x_ref[...], w_ref[...], preferred_element_type=jnp.float32)
        + b_ref[...]
    ).astype(o_ref.dtype)


def pack_params(params):
    """Fold the 3 ConvTranspose2d layers into one (256,128) weight + (1,128) bias.

    Valid because there are no nonlinearities between the layers and k=2,s=2
    conv-transpose maps each input pixel to a disjoint 2x2 output patch, so the
    composition is an independent linear map per input pixel.
    Column order: (i1, j1, i2, j2, i3, j3, cout)  ->  128 columns.
    """
    (w1, b1), (w2, b2), (w3, b3) = params
    cin = w1.shape[0]                       # 256
    cout = w3.shape[1]                      # 2

    # W_eff[c0, i1,j1,i2,j2,i3,j3,c3] = sum_{c1,c2} w1[c0,c1,i1,j1]
    #                                   * w2[c1,c2,i2,j2] * w3[c2,c3,i3,j3]
    w_eff = jnp.einsum('aAij,ABkl,Bcmn->aijklmnc', w1, w2, w3)
    w_eff = w_eff.reshape(cin, 64 * cout)                       # (256, 128)

    # Bias entering layer 3 (per c2, i2, j2), then composed through w3 + b3.
    t1 = jnp.einsum('A,ABkl->Bkl', b1, w2) + b2[:, None, None]          # (64,2,2)
    t2 = jnp.einsum('Bkl,Bcmn->klmnc', t1, w3) + b3[None, None, None, None, :]
    # Broadcast over (i1, j1): the layer-1 offset does not affect the bias.
    b_eff = jnp.broadcast_to(t2[None, None], (2, 2) + t2.shape)
    b_eff = b_eff.reshape(1, 64 * cout)                          # (1, 128)
    return w_eff, b_eff


def decoder_forward(x, packed, *, tm=512):
    """x: (N, 256, H, W) NCHW  ->  (N, 2, 8H, 8W) NCHW."""
    w_eff, b_eff = packed
    N, cin, H, W = x.shape
    M = N * H * W
    n_cols = w_eff.shape[1]          # 128 = 4*4*4 * cout
    cout = n_cols // 64              # 2

    # NCHW -> (M, Cin): channel-last so Cin (256) is the lane dim.
    xm = jnp.transpose(x, (0, 2, 3, 1)).reshape(M, cin)

    # Row tiling: single block at toy sizes, 512-row tiles (multiple of 8,
    # comfortably within v7x's smaller VMEM) at production sizes.
    TM = M if M <= tm else tm
    grid = (pl.cdiv(M, TM),)

    o = pl.pallas_call(
        _decoder_kernel,
        out_shape=jax.ShapeDtypeStruct((M, n_cols), x.dtype),
        grid=grid,
        in_specs=[
            pl.BlockSpec((TM, cin), lambda i: (i, 0)),        # activations: tiled
            pl.BlockSpec((cin, n_cols), lambda i: (0, 0)),    # weight: resident
            pl.BlockSpec((1, n_cols), lambda i: (0, 0)),      # bias: resident
        ],
        out_specs=pl.BlockSpec((TM, n_cols), lambda i: (i, 0)),
        compiler_params=pltpu.CompilerParams(
            dimension_semantics=("parallel",),
            # Let XLA fuse the NCHW->(M,256) transpose into the pallas input.
            allow_input_fusion=[True, False, False],
        ),
        cost_estimate=pl.CostEstimate(
            flops=2 * M * cin * n_cols,
            transcendentals=0,
            bytes_accessed=4 * (M * (cin + n_cols) + cin * n_cols + n_cols),
        ),
    )(xm, w_eff, b_eff)

    # Un-scatter the 128 columns (i1,j1,i2,j2,i3,j3,c) into each pixel's 8x8
    # output patch: out row = 8h + 4*i1 + 2*i2 + i3 (same for columns).
    o = o.reshape(N, H, W, 2, 2, 2, 2, 2, 2, cout)   # (n,h,w,i1,j1,i2,j2,i3,j3,c)
    o = jnp.transpose(o, (0, 9, 1, 3, 5, 7, 2, 4, 6, 8))  # (n,c,h,i1,i2,i3,w,j1,j2,j3)
    return o.reshape(N, cout, 8 * H, 8 * W)


def init_params(key):
    """Deterministic parameter init (shapes from the module __init__)."""
    shapes = [
        (256, 128),  # upconv1
        (128, 64),   # upconv2
        (64, 2),     # upconv3
    ]
    params = []
    for i, (cin, cout) in enumerate(shapes):
        kw, kb = jax.random.split(jax.random.fold_in(key, i))
        # Matches PyTorch's default uniform(-1/sqrt(cin*k*k), 1/sqrt(cin*k*k)) scale.
        bound = 1.0 / jnp.sqrt(cin * 2.0 * 2.0)
        w = jax.random.uniform(kw, (cin, cout, 2, 2), jnp.float32, -bound, bound)
        bias = jax.random.uniform(kb, (cout,), jnp.float32, -bound, bound)
        params.append((w, bias))
    return params


def decoder_reference(x, params):
    """Pure-JAX reference (einsum, layer by layer) for correctness checking."""
    for w, b in params:
        N, Cin, H, W = x.shape
        Cout = w.shape[1]
        y = jnp.einsum('nchw,coij->nohiwj', x, w)          # (N,Cout,H,2,W,2)
        y = y.reshape(N, Cout, 2 * H, 2 * W) + b[None, :, None, None]
        x = y
    return x


if __name__ == "__main__":
    key = jax.random.PRNGKey(0)
    kx, kp = jax.random.split(key)
    # Small spatial input; channel count (256) is fixed by the module.
    x = jax.random.normal(kx, (2, 256, 4, 4), jnp.float32)
    params = init_params(kp)
    packed = pack_params(params)   # one-time weight fold (3 layers -> 1 matmul)

    fwd = jax.jit(decoder_forward)
    out = jax.block_until_ready(fwd(x, packed))
    assert out.shape == (2, 2, 32, 32), out.shape

    ref = decoder_reference(x, params)
    max_err = float(jnp.max(jnp.abs(out - ref)))
    assert jnp.allclose(out, ref, atol=2e-3, rtol=2e-3), max_err

    print("KERNEL_OK")
</pallas_src>

<mosaic_0001>
module attributes {stable_mosaic.version = 11 : i64} {
  func.func @_decoder_kernel(%arg0: i32, %arg1: memref<32x256xf32, #tpu.memory_space<vmem>>, %arg2: memref<256x128xf32, #tpu.memory_space<vmem>>, %arg3: memref<1x128xf32, #tpu.memory_space<vmem>>, %arg4: memref<32x128xf32, #tpu.memory_space<vmem>>) attributes {dimension_semantics = [#tpu.dimension_semantics<parallel>], iteration_bounds = array<i64: 1>, scalar_prefetch = 0 : i64, scratch_operands = 0 : i64, tpu.core_type = #tpu.core_type<tc>, window_params = [{transform_indices = @transform_0, window_bounds = array<i64: 32, 256>}, {pipeline_mode = #tpu.pipeline_mode<synchronous>, transform_indices = @transform_1, window_bounds = array<i64: 256, 128>}, {pipeline_mode = #tpu.pipeline_mode<synchronous>, transform_indices = @transform_2, window_bounds = array<i64: 1, 128>}, {transform_indices = @transform_3, window_bounds = array<i64: 32, 128>}]} {
    %c0 = arith.constant 0 : index
    %c0_0 = arith.constant 0 : index
    %0 = vector.load %arg1[%c0, %c0_0] : memref<32x256xf32, #tpu.memory_space<vmem>>, vector<32x256xf32>
    %c0_1 = arith.constant 0 : index
    %c0_2 = arith.constant 0 : index
    %1 = vector.load %arg2[%c0_1, %c0_2] : memref<256x128xf32, #tpu.memory_space<vmem>>, vector<256x128xf32>
    %cst = arith.constant dense<0.000000e+00> : vector<32x128xf32>
    %2 = tpu.matmul %0, %1, %cst {dimension_numbers = #tpu.dot_dimension_numbers<[1], [0], [0], [1], [0, 0, 1, 1], [], []>} : vector<32x256xf32>, vector<256x128xf32>, vector<32x128xf32> -> vector<32x128xf32>
    %c0_3 = arith.constant 0 : index
    %c0_4 = arith.constant 0 : index
    %3 = vector.load %arg3[%c0_3, %c0_4] : memref<1x128xf32, #tpu.memory_space<vmem>>, vector<1x128xf32>
    %4 = vector.broadcast %3 : vector<1x128xf32> to vector<32x128xf32>
    %5 = arith.addf %2, %4 : vector<32x128xf32>
    %c0_5 = arith.constant 0 : index
    %c0_6 = arith.constant 0 : index
    %6 = vector.load %arg4[%c0_5, %c0_6] : memref<32x128xf32, #tpu.memory_space<vmem>>, vector<32x128xf32>
    tpu.vector_store %arg4[%c0_5, %c0_6], %5 {strides = array<i32>} : memref<32x128xf32, #tpu.memory_space<vmem>>, vector<32x128xf32>,
    return
  }
  func.func @transform_0(%arg0: i32) -> (i32, i32) {
    %c0_i32 = arith.constant 0 : i32
    %c0_i32_0 = arith.constant 0 : i32
    return %arg0, %c0_i32 : i32, i32
  }
  func.func @transform_1(%arg0: i32) -> (i32, i32) {
    %c0_i32 = arith.constant 0 : i32
    %c0_i32_0 = arith.constant 0 : i32
    %c0_i32_1 = arith.constant 0 : i32
    return %c0_i32, %c0_i32_0 : i32, i32
  }
  func.func @transform_2(%arg0: i32) -> (i32, i32) {
    %c0_i32 = arith.constant 0 : i32
    %c0_i32_0 = arith.constant 0 : i32
    %c0_i32_1 = arith.constant 0 : i32
    return %c0_i32, %c0_i32_0 : i32, i32
  }
  func.func @transform_3(%arg0: i32) -> (i32, i32) {
    %c0_i32 = arith.constant 0 : i32
    %c0_i32_0 = arith.constant 0 : i32
    return %arg0, %c0_i32 : i32, i32
  }
}

</mosaic_0001>

<bundles_post_ra>
// kernel: decoder_forward.1
= control target key start
LH: loop header
LB: loop body
LE: loop exit
PB: predicated region body
PF: predicated region fallthrough
CT: control target
= control target key end

     0   :  { %8 = vsyncpa [#allocation3], 0  ;;  %s289_s12 = smov [#allocation2]   ;;  %s363_s0 = inlined_call_operand.vmem [shape: f32[32,256], index: 0, kind: input, shape index: {}]   ;;  %s364_s1 = inlined_call_operand.hbm [shape: f32[256,128], index: 1, kind: input, shape index: {}]   ;;  %s365_s2 = inlined_call_operand.vmem [shape: f32[1,128], index: 2, kind: input, shape index: {}]   ;;  %s366_s3 = inlined_call_operand.vmem [shape: f32[32,128], index: 3, kind: output, shape index: {}]  }
   0x1   :  { %s16_s13 = sshll.u32 %s289_s12, 4  ;;  %s265_s16 = scalar_lea.hbm %s364_s1, 4096  ;;  %s17_s13 = int_to_ptr.vmem [resolvable:$true] %s16_s13 }
   0x2   :  { %p266_p0 = scmp.ne.s32.totalorder %s364_s1, %s265_s16  ;;  %p269_p1 = scmp.lt.u32.totalorder %s265_s16, %s364_s1 }
   0x4   :  { %p271_p2 = pnand %p269_p1, %p266_p0 }
   0x6   :  { %274 = shalt.err (!%p271_p2)
}
   0x7   :  { %s275_s21 = scalar_lea.vmem %s17_s13, 4096  ;;  %p280_p4 = scmp.lt.s32.totalorder %s17_s13, %s17_s13 }
   0x8   :  { %p276_p3 = scmp.ne.s32.totalorder %s17_s13, %s275_s21  ;;  %p281_p5 = scmp.lt.s32.totalorder %s275_s21, %s275_s21 }
   0xa   :  { %p282_p6 = por %p281_p5, %p280_p4 }
   0xc   :  { %p283_p7 = pnand %p282_p6, %p276_p3 }
   0xe   :  { %286 = shalt.err (!%p283_p7)
}
   0xf   :  { %s290_s22 = smov 128   ;;  %s291_s23 = smov 8  }
  0x10   :  { %22 = dma.hbm_to_vmem [thread:$0]  %s364_s1, 4096, %s17_s13, [#allocation3], %s290_s22, %s290_s22, %s291_s23  }
  0x11   :  { %287 = dma.done.wait [#allocation3], 4096  }
  0x12   :  { %288 = vsyncadd [#allocation3], 4294963200  ;;  %v52_v0 = vld [vmem:[#allocation2 + $0x80] sm:$0xff]  ;;  %v53_v1 = vld [vmem:[#allocation2 + $0x88] sm:$0xff] }
  0x13   :  { %v36_v2 = vld [vmem:[#allocation2] sm:$0xff]  ;;  %v214_v3 = vpack.c.bf16 %v53_v1, %v52_v0  ;;  %v37_v4 = vld [vmem:[#allocation2 + $0x8] sm:$0xff]  ;;  %v54_v5 = vld [vmem:[#allocation2 + $0x90] sm:$0xff] }
  0x14   :  { %v55_v6 = vld [vmem:[#allocation2 + $0x98] sm:$0xff]  ;;  %v216_v7 = vpack.c.bf16 %v37_v4, %v36_v2  ;;  %v38_v9 = vld [vmem:[#allocation2 + $0x10] sm:$0xff]  ;;  %v56_v11 = vld [vmem:[#allocation2 + $0xa0] sm:$0xff] }
  0x15   :  { %v218_v8 = vpack.c.bf16 %v55_v6, %v54_v5  ;;  %v39_v10 = vld [vmem:[#allocation2 + $0x18] sm:$0xff]  ;;  %215 = vmatprep.subr.bf16.mxu0 %v214_v3  ;;  %246 = vmatprep.subr.bf16.mxu1 %v214_v3  ;;  %v57_v12 = vld [vmem:[#allocation2 + $0xa8] sm:$0xff]  ;;  %v40_v15 = vld [vmem:[#allocation2 + $0x20] sm:$0xff] }
  0x16   :  { %217 = vmatpush3.bf16.msra.mxu0 %v216_v7  ;;  %254 = vmatpush3.bf16.msra.mxu1 %v216_v7  ;;  %v220_v13 = vpack.c.bf16 %v39_v10, %v38_v9  ;;  %v222_v14 = vpack.c.bf16 %v57_v12, %v56_v11  ;;  %v41_v16 = vld [vmem:[#allocation2 + $0x28] sm:$0xff]  ;;  %v58_v17 = vld [vmem:[#allocation2 + $0xb0] sm:$0xff]  ;;  %v59_v18 = vld [vmem:[#allocation2 + $0xb8] sm:$0xff] }
  0x17   :  { %219 = vmatprep.subr.bf16.mxu0 %v218_v8  ;;  %247 = vmatprep.subr.bf16.mxu1 %v218_v8  ;;  %v224_v19 = vpack.c.bf16 %v41_v16, %v40_v15  ;;  %v226_v20 = vpack.c.bf16 %v59_v18, %v58_v17  ;;  %v42_v21 = vld [vmem:[#allocation2 + $0x30] sm:$0xff]  ;;  %v43_v22 = vld [vmem:[#allocation2 + $0x38] sm:$0xff]  ;;  %v60_v23 = vld [vmem:[#allocation2 + $0xc0] sm:$0xff] }
  0x18   :  { %v61_v24 = vld [vmem:[#allocation2 + $0xc8] sm:$0xff]  ;;  %v228_v27 = vpack.c.bf16 %v43_v22, %v42_v21  ;;  %v44_v29 = vld [vmem:[#allocation2 + $0x40] sm:$0xff]  ;;  %v62_v31 = vld [vmem:[#allocation2 + $0xd0] sm:$0xff] }
  0x19   :  { %v29_v25 = vld [vmem:[%s363_s0 + $0x8] sm:$0xff]  ;;  %v230_v28 = vpack.c.bf16 %v61_v24, %v60_v23  ;;  %v63_v32 = vld [vmem:[#allocation2 + $0xd8] sm:$0xff]  ;;  %v46_v35 = vld [vmem:[#allocation2 + $0x50] sm:$0xff] }
  0x1a   :  { %221 = vmatpush3.bf16.msra.mxu0 %v220_v13  ;;  %255 = vmatpush3.bf16.msra.mxu1 %v220_v13  ;;  %v33_v26 = vld [vmem:[%s363_s0 + $0x28] sm:$0xff]  ;;  %v234_v34 = vpack.c.bf16 %v63_v32, %v62_v31  ;;  %v47_v36 = vld [vmem:[#allocation2 + $0x58] sm:$0xff]  ;;  %v64_v37 = vld [vmem:[#allocation2 + $0xe0] sm:$0xff] }
  0x1b   :  { %223 = vmatprep.subr.bf16.mxu0 %v222_v14  ;;  %248 = vmatprep.subr.bf16.mxu1 %v222_v14  ;;  %v45_v30 = vld [vmem:[#allocation2 + $0x48] sm:$0xff]  ;;  %v236_v39 = vpack.c.bf16 %v47_v36, %v46_v35  ;;  %v48_v41 = vld [vmem:[#allocation2 + $0x60] sm:$0xff]  ;;  %v66_v43 = vld [vmem:[#allocation2 + $0xf0] sm:$0xff] }
  0x1c   :  { %139 = vmatprep.mubr.f32.mxu0 %v29_v25  ;;  %149 = vmatprep.mubr.f32.mxu1 %v33_v26  ;;  %v232_v33 = vpack.c.bf16 %v45_v30, %v44_v29  ;;  %v65_v38 = vld [vmem:[#allocation2 + $0xe8] sm:$0xff]  ;;  %v67_v44 = vld [vmem:[#allocation2 + $0xf8] sm:$0xff]  ;;  %v50_v47 = vld [vmem:[#allocation2 + $0x70] sm:$0xff] }
  0x1d   :  { %v238_v40 = vpack.c.bf16 %v65_v38, %v64_v37  ;;  %v49_v42 = vld [vmem:[#allocation2 + $0x68] sm:$0xff]  ;;  %v242_v46 = vpack.c.bf16 %v67_v44, %v66_v43  ;;  %v51_v48 = vld [vmem:[#allocation2 + $0x78] sm:$0xff]  ;;  %v28_v50 = vld [vmem:[%s363_s0] sm:$0xff] }
  0x1e   :  { %225 = vmatpush3.bf16.msra.mxu0 %v224_v19  ;;  %256 = vmatpush3.bf16.msra.mxu1 %v224_v19  ;;  %v240_v45 = vpack.c.bf16 %v49_v42, %v48_v41  ;;  %v244_v49 = vpack.c.bf16 %v51_v48, %v50_v47  ;;  %v32_v51 = vld [vmem:[%s363_s0 + $0x20] sm:$0xff]  ;;  %v31_v52 = vld [vmem:[%s363_s0 + $0x18] sm:$0xff]  ;;  %v30_v54 = vld [vmem:[%s363_s0 + $0x10] sm:$0xff] }
  0x1f   :  { %227 = vmatprep.subr.bf16.mxu0 %v226_v20  ;;  %249 = vmatprep.subr.bf16.mxu1 %v226_v20  ;;  %v35_v53 = vld [vmem:[%s363_s0 + $0x38] sm:$0xff]  ;;  %v34_v55 = vld [vmem:[%s363_s0 + $0x30] sm:$0xff]  ;;  %v169_v58 = vld [vmem:[%s365_s2] ss:$0 sm:$0xff] }
  0x22   :  { %229 = vmatpush3.bf16.msra.mxu0 %v228_v27  ;;  %257 = vmatpush3.bf16.msra.mxu1 %v228_v27 }
  0x23   :  { %231 = vmatprep.subr.bf16.mxu0 %v230_v28  ;;  %250 = vmatprep.subr.bf16.mxu1 %v230_v28 }
  0x26   :  { %233 = vmatpush3.bf16.msra.mxu0 %v232_v33  ;;  %258 = vmatpush3.bf16.msra.mxu1 %v232_v33 }
  0x27   :  { %235 = vmatprep.subr.bf16.mxu0 %v234_v34  ;;  %251 = vmatprep.subr.bf16.mxu1 %v234_v34 }
  0x2a   :  { %237 = vmatpush3.bf16.msra.mxu0 %v236_v39  ;;  %259 = vmatpush3.bf16.msra.mxu1 %v236_v39 }
  0x2b   :  { %239 = vmatprep.subr.bf16.mxu0 %v238_v40  ;;  %252 = vmatprep.subr.bf16.mxu1 %v238_v40 }
  0x2e   :  { %241 = vmatpush3.bf16.msra.mxu0 %v240_v45  ;;  %260 = vmatpush3.bf16.msra.mxu1 %v240_v45 }
  0x2f   :  { %243 = vmatprep.subr.bf16.mxu0 %v242_v46  ;;  %253 = vmatprep.subr.bf16.mxu1 %v242_v46 }
  0x32   :  { %245 = vmatpush3.bf16.msra.mxu0 %v244_v49  ;;  %261 = vmatpush3.bf16.msra.mxu1 %v244_v49 }
  0x35   :  { %140 = vmatmul.mubr.f32.vlgmr.msra.gmra.mrb[0].mxu0 %v28_v50  ;;  %150 = vmatmul.mubr.f32.vlgmr.msra.gmra.mrb[0].mxu1 %v32_v51 }
  0x36   :  { %144 = vmatprep.mubr.f32.mxu0 %v31_v52  ;;  %154 = vmatprep.mubr.f32.mxu1 %v35_v53 }
  0x39   :  { %145 = vmatmul.mubr.f32.gmra.mrb[2].mxu0 %v30_v54  ;;  %155 = vmatmul.mubr.f32.gmra.mrb[2].mxu1 %v34_v55 }
 0x108   :  { %v202_v56 = vpop.f32.mrb[0].mxu0  ;;  %v208_v57 = vpop.f32.mrb[0].mxu1 }
 0x109   :  { %v203_v59 = vpop.f32.mrb[1].mxu0  ;;  %v209_v60 = vpop.f32.mrb[1].mxu1 }
 0x10a   :  { %v204_v61 = vadd.f32 %v203_v59, %v202_v56  ;;  %v210_v62 = vadd.f32 %v209_v60, %v208_v57 }
 0x10c   :  { %v142_v63 = vadd.f32 %v204_v61, %v169_v58  ;;  %v152_v0 = vadd.f32 %v210_v62, %v169_v58  ;;  %v205_v1 = vpop.f32.mrb[2].mxu0  ;;  %v211_v2 = vpop.f32.mrb[2].mxu1 }
 0x10d   :  { %v206_v3 = vpop.f32.mrb[3].mxu0  ;;  %v212_v4 = vpop.f32.mrb[3].mxu1 }
 0x10e   :  { %160 = vst [vmem:[%s366_s3] sm:$0xff] %v142_v63  ;;  %162 = vst [vmem:[%s366_s3 + $0x10] sm:$0xff] %v152_v0  ;;  %v207_v5 = vadd.f32 %v206_v3, %v205_v1  ;;  %v213_v6 = vadd.f32 %v212_v4, %v211_v2 }
 0x110   :  { %v147_v7 = vadd.f32 %v207_v5, %v169_v58  ;;  %v157_v8 = vadd.f32 %v213_v6, %v169_v58 }
 0x112   :  { %161 = vst [vmem:[%s366_s3 + $0x8] sm:$0xff] %v147_v7  ;;  %163 = vst [vmem:[%s366_s3 + $0x18] sm:$0xff] %v157_v8 }
 0x113   :  { %168 = vsyncpa [#allocation3], 1 }

</bundles_post_ra>
